<compile_context>
chip_gen: v7x
topology: tpu7x:2x2x1
jax: 0.10.0
libtpu: 0.0.40
codegen_flags: <defaults>
</compile_context>

<pallas_src>
import functools

import jax
import jax.numpy as jnp
from jax import lax
from jax.experimental import pallas as pl
from jax.experimental.pallas import tpu as pltpu

_OUT_LANES = 128  # lane-dense output slab width


def _round_up(x, m):
    return -(-x // m) * m


def _token_logprob_kernel(h_ref, w_ref, ids_ref, out_ref,
                          m_sc, l_sc, t_sc, *, tv, v_actual, v_padded):
    """Fused lm_head matmul + online log_softmax + token gather.

    Grid: (row_tiles, vocab_tiles); vocab is the inner ("arbitrary") axis.

    h_ref:   [tm, H]          bf16   hidden states (row tile)
    w_ref:   [H, tv]          bf16   lm_head weight (vocab tile)
    ids_ref: [tm, 1]          int32  target token ids
    out_ref: [tm, _OUT_LANES] f32    log p(id | hidden), replicated over lanes
    m_sc:    [tm, 1] f32  running max
    l_sc:    [tm, 1] f32  running sum of exp(logit - max)
    t_sc:    [tm, 1] f32  raw logit of the target token
    """
    j = pl.program_id(1)

    @pl.when(j == 0)
    def _():
        m_sc[...] = jnp.full_like(m_sc, -jnp.inf)
        l_sc[...] = jnp.zeros_like(l_sc)
        t_sc[...] = jnp.zeros_like(t_sc)

    # MXU: bf16 x bf16 -> f32 accumulate.
    s = jnp.dot(h_ref[...], w_ref[...], preferred_element_type=jnp.float32)

    # Global vocab column index of each lane in this tile.
    col = lax.broadcasted_iota(jnp.int32, s.shape, 1) + j * tv

    if v_padded != v_actual:
        # Padded vocab columns (zeros in W) must not contribute to the softmax.
        s = jnp.where(col < v_actual, s, jnp.float32(-1e30))

    # Online softmax statistics (all f32).
    m_prev = m_sc[...]
    m_new = jnp.maximum(m_prev, jnp.max(s, axis=-1, keepdims=True))
    alpha = jnp.exp(m_prev - m_new)
    l_sc[...] = alpha * l_sc[...] + jnp.sum(jnp.exp(s - m_new), axis=-1,
                                            keepdims=True)
    m_sc[...] = m_new

    # Accumulate the raw logit of the target token (matches in exactly one
    # vocab tile), instead of materializing a full log-prob tensor.
    ids = ids_ref[...]                                   # [tm, 1]
    t_sc[...] += jnp.sum(jnp.where(col == ids, s, 0.0), axis=-1, keepdims=True)

    @pl.when(j == pl.num_programs(1) - 1)
    def _():
        logp = t_sc[...] - m_sc[...] - jnp.log(l_sc[...])          # [tm, 1]
        out_ref[...] = jnp.broadcast_to(logp, out_ref.shape).astype(out_ref.dtype)


def token_logprobs(hidden, w, ids, *, tm=256, tv=512):
    """hidden: [rows, H], w: [H, V], ids: [rows] int -> [rows] f32 log-probs."""
    rows, H = hidden.shape
    H2, V = w.shape
    assert H == H2

    # Clamp tiles for tiny problems, keep (8, 128) alignment, pad rows / vocab.
    tm = _round_up(min(tm, _round_up(rows, 8)), 8)
    tv = _round_up(min(tv, _round_up(V, 128)), 128)
    rows_p = _round_up(rows, tm)
    v_p = _round_up(V, tv)

    h = hidden.astype(jnp.bfloat16)
    wq = w.astype(jnp.bfloat16)
    ids2d = ids.reshape(rows, 1).astype(jnp.int32)
    if rows_p != rows:
        h = jnp.pad(h, ((0, rows_p - rows), (0, 0)))
        ids2d = jnp.pad(ids2d, ((0, rows_p - rows), (0, 0)))
    if v_p != V:
        wq = jnp.pad(wq, ((0, 0), (0, v_p - V)))

    kernel = functools.partial(_token_logprob_kernel,
                               tv=tv, v_actual=V, v_padded=v_p)

    out = pl.pallas_call(
        kernel,
        out_shape=jax.ShapeDtypeStruct((rows_p, _OUT_LANES), jnp.float32),
        grid_spec=pltpu.PrefetchScalarGridSpec(
            num_scalar_prefetch=0,
            grid=(rows_p // tm, v_p // tv),
            in_specs=[
                pl.BlockSpec((tm, H), lambda i, j: (i, 0)),   # hidden row tile
                pl.BlockSpec((H, tv), lambda i, j: (0, j)),   # W vocab tile
                pl.BlockSpec((tm, 1), lambda i, j: (i, 0)),   # token ids
            ],
            out_specs=pl.BlockSpec((tm, _OUT_LANES), lambda i, j: (i, 0)),
            scratch_shapes=[
                pltpu.VMEM((tm, 1), jnp.float32),   # running max
                pltpu.VMEM((tm, 1), jnp.float32),   # running sum exp
                pltpu.VMEM((tm, 1), jnp.float32),   # target logit
            ],
        ),
        compiler_params=pltpu.CompilerParams(
            # rows are independent (megacore-shardable); vocab is a reduction.
            dimension_semantics=("parallel", "arbitrary"),
            # Default tiles fit the default scoped VMEM on v5e/v6e/v7x; raise
            # vmem_limit_bytes here only if tm/tv are grown for v5e/v6e.
        ),
    )(h, wq, ids2d)
    return out[:rows, 0]


def forward_pass(hidden_states, input_ids, lm_head_w, n_logits_to_keep,
                 grad_acc_batch_size, *, tm=256, tv=512):
    """Mirror of GRPO `_forward_pass` (generator -> list of per-chunk tensors).

    hidden_states: [B, n_logits_to_keep + 1, H]  (stand-in for the model trunk)
    input_ids:     [B, S] int32
    lm_head_w:     [H, V]
    Returns list of [chunk_b, n_logits_to_keep] float32 per-token log-probs.
    The whole batch runs in ONE pallas_call; grad-acc chunking is pure slicing.
    """
    B = input_ids.shape[0]
    T = n_logits_to_keep
    H = hidden_states.shape[-1]

    h = hidden_states[:, :-1, :]                       # logits[:, :-1, :]
    ids = input_ids[:, -T:]                            # [B, T]
    flat_lp = token_logprobs(h.reshape(B * T, H), lm_head_w,
                             ids.reshape(B * T), tm=tm, tv=tv)
    lp = flat_lp.reshape(B, T)

    n_chunks = -(-B // grad_acc_batch_size)
    return [lp[n * grad_acc_batch_size:(n + 1) * grad_acc_batch_size]
            for n in range(n_chunks)]


# TODO(synk): the game-playing / tokenizer / teacher-agent orchestration in
# _forward_generate has no tensor hot path and no Pallas equivalent; only the
# _forward_train / _forward_ref log-prob computation is implemented.


if __name__ == "__main__":
    key = jax.random.PRNGKey(0)
    # batch, seq, n_logits_to_keep, hidden, vocab  (small, awkward on purpose:
    # rows = B*T = 14 exercises row padding, V = 200 exercises vocab masking).
    B, S, T, H, V = 2, 16, 7, 32, 200
    GRAD_ACC_BS = 1

    k_h, k_w, k_ids = jax.random.split(key, 3)
    hidden_states = jax.random.normal(k_h, (B, T + 1, H), dtype=jnp.float32)
    lm_head_w = (jax.random.normal(k_w, (H, V), dtype=jnp.float32)
                 / jnp.sqrt(jnp.float32(H)))
    input_ids = jax.random.randint(k_ids, (B, S), 0, V, dtype=jnp.int32)

    # Pure-JAX reference of the torch semantics (f32).
    logits_ref = jnp.einsum("bth,hv->btv", hidden_states[:, :-1, :], lm_head_w)
    logp_ref = jax.nn.log_softmax(logits_ref, axis=-1)
    ids_ref = input_ids[:, -T:]
    ref = jnp.take_along_axis(logp_ref, ids_ref[..., None], axis=-1)[..., 0]

    # 1) default tiles (clamped for the tiny problem, single vocab step)
    chunks = forward_pass(hidden_states, input_ids, lm_head_w,
                          n_logits_to_keep=T,
                          grad_acc_batch_size=GRAD_ACC_BS)
    result = jnp.concatenate(chunks, axis=0)
    jax.block_until_ready(result)
    assert result.shape == (B, T)
    assert jnp.allclose(result, ref, atol=5e-2, rtol=5e-2)

    # 2) small explicit tiles: exercises row padding (14 -> 16), multi-tile
    #    online softmax over the vocab axis (2 tiles) and vocab-tail masking.
    chunks2 = forward_pass(hidden_states, input_ids, lm_head_w,
                           n_logits_to_keep=T,
                           grad_acc_batch_size=GRAD_ACC_BS, tm=8, tv=128)
    result2 = jnp.concatenate(chunks2, axis=0)
    jax.block_until_ready(result2)
    assert result2.shape == (B, T)
    assert jnp.allclose(result2, ref, atol=5e-2, rtol=5e-2)

    print("KERNEL_OK")
</pallas_src>

<mosaic_0001>
module attributes {stable_mosaic.version = 11 : i64} {
  func.func @_token_logprob_kernel(%arg0: i32, %arg1: i32, %arg2: memref<16x32xbf16, #tpu.memory_space<vmem>>, %arg3: memref<32x256xbf16, #tpu.memory_space<vmem>>, %arg4: memref<16x1xi32, #tpu.memory_space<vmem>>, %arg5: memref<16x128xf32, #tpu.memory_space<vmem>>, %arg6: memref<16x1xf32, #tpu.memory_space<vmem>>, %arg7: memref<16x1xf32, #tpu.memory_space<vmem>>, %arg8: memref<16x1xf32, #tpu.memory_space<vmem>>) attributes {dimension_semantics = [#tpu.dimension_semantics<parallel>, #tpu.dimension_semantics<arbitrary>], iteration_bounds = array<i64: 1, 1>, scalar_prefetch = 0 : i64, scratch_operands = 3 : i64, tpu.core_type = #tpu.core_type<tc>, window_params = [{transform_indices = @transform_0, window_bounds = array<i64: 16, 32>}, {transform_indices = @transform_1, window_bounds = array<i64: 32, 256>}, {transform_indices = @transform_2, window_bounds = array<i64: 16, 1>}, {transform_indices = @transform_3, window_bounds = array<i64: 16, 128>}]} {
    %c0_i32 = arith.constant 0 : i32
    %0 = arith.cmpi eq, %arg1, %c0_i32 : i32
    %1 = arith.extui %0 : i1 to i32
    %c0_i32_0 = arith.constant 0 : i32
    %2 = arith.cmpi ne, %1, %c0_i32_0 : i32
    scf.if %2 {
      %cst_25 = arith.constant 0xFF800000 : f32
      %43 = vector.broadcast %cst_25 : f32 to vector<16x1xf32>
      %c0_26 = arith.constant 0 : index
      %c0_27 = arith.constant 0 : index
      %44 = vector.load %arg6[%c0_26, %c0_27] : memref<16x1xf32, #tpu.memory_space<vmem>>, vector<16x1xf32>
      tpu.vector_store %arg6[%c0_26, %c0_27], %43 {strides = array<i32>} : memref<16x1xf32, #tpu.memory_space<vmem>>, vector<16x1xf32>,
      %cst_28 = arith.constant 0.000000e+00 : f32
      %45 = vector.broadcast %cst_28 : f32 to vector<16x1xf32>
      %c0_29 = arith.constant 0 : index
      %c0_30 = arith.constant 0 : index
      %46 = vector.load %arg7[%c0_29, %c0_30] : memref<16x1xf32, #tpu.memory_space<vmem>>, vector<16x1xf32>
      tpu.vector_store %arg7[%c0_29, %c0_30], %45 {strides = array<i32>} : memref<16x1xf32, #tpu.memory_space<vmem>>, vector<16x1xf32>,
      %cst_31 = arith.constant 0.000000e+00 : f32
      %47 = vector.broadcast %cst_31 : f32 to vector<16x1xf32>
      %c0_32 = arith.constant 0 : index
      %c0_33 = arith.constant 0 : index
      %48 = vector.load %arg8[%c0_32, %c0_33] : memref<16x1xf32, #tpu.memory_space<vmem>>, vector<16x1xf32>
      tpu.vector_store %arg8[%c0_32, %c0_33], %47 {strides = array<i32>} : memref<16x1xf32, #tpu.memory_space<vmem>>, vector<16x1xf32>,
    } else {
    }
    %c0 = arith.constant 0 : index
    %c0_1 = arith.constant 0 : index
    %3 = vector.load %arg2[%c0, %c0_1] : memref<16x32xbf16, #tpu.memory_space<vmem>>, vector<16x32xbf16>
    %c0_2 = arith.constant 0 : index
    %c0_3 = arith.constant 0 : index
    %4 = vector.load %arg3[%c0_2, %c0_3] : memref<32x256xbf16, #tpu.memory_space<vmem>>, vector<32x256xbf16>
    %cst = arith.constant dense<0.000000e+00> : vector<16x256xf32>
    %5 = tpu.matmul %3, %4, %cst {dimension_numbers = #tpu.dot_dimension_numbers<[1], [0], [0], [1], [0, 0, 1, 1], [], []>} : vector<16x32xbf16>, vector<32x256xbf16>, vector<16x256xf32> -> vector<16x256xf32>
    %6 = tpu.iota {dimensions = array<i32: 1>} : vector<16x256xi32>
    %c256_i32 = arith.constant 256 : i32
    %7 = arith.muli %arg1, %c256_i32 : i32
    %8 = vector.broadcast %7 : i32 to vector<16x256xi32>
    %9 = arith.addi %6, %8 : vector<16x256xi32>
    %c200_i32 = arith.constant 200 : i32
    %10 = vector.broadcast %c200_i32 : i32 to vector<16x256xi32>
    %11 = arith.cmpi slt, %9, %10 : vector<16x256xi32>
    %cst_4 = arith.constant -1.000000e+30 : f32
    %12 = vector.broadcast %cst_4 : f32 to vector<16x256xf32>
    %13 = arith.select %11, %5, %12 : vector<16x256xi1>, vector<16x256xf32>
    %c0_5 = arith.constant 0 : index
    %c0_6 = arith.constant 0 : index
    %14 = vector.load %arg6[%c0_5, %c0_6] : memref<16x1xf32, #tpu.memory_space<vmem>>, vector<16x1xf32>
    %cst_7 = arith.constant dense<0xFF800000> : vector<16xf32>
    %15 = vector.multi_reduction <maximumf>, %13, %cst_7 [1] : vector<16x256xf32> to vector<16xf32>
    %16 = vector.shape_cast %15 : vector<16xf32> to vector<16x1xf32>
    %17 = arith.maximumf %14, %16 : vector<16x1xf32>
    %18 = arith.subf %14, %17 : vector<16x1xf32>
    %19 = math.exp %18 : vector<16x1xf32>
    %c0_8 = arith.constant 0 : index
    %c0_9 = arith.constant 0 : index
    %20 = vector.load %arg7[%c0_8, %c0_9] : memref<16x1xf32, #tpu.memory_space<vmem>>, vector<16x1xf32>
    %21 = arith.mulf %19, %20 : vector<16x1xf32>
    %22 = vector.broadcast %17 : vector<16x1xf32> to vector<16x256xf32>
    %23 = arith.subf %13, %22 : vector<16x256xf32>
    %24 = math.exp %23 : vector<16x256xf32>
    %cst_10 = arith.constant dense<0.000000e+00> : vector<16xf32>
    %25 = vector.multi_reduction <add>, %24, %cst_10 [1] : vector<16x256xf32> to vector<16xf32>
    %26 = vector.shape_cast %25 : vector<16xf32> to vector<16x1xf32>
    %27 = arith.addf %21, %26 : vector<16x1xf32>
    %c0_11 = arith.constant 0 : index
    %c0_12 = arith.constant 0 : index
    %28 = vector.load %arg7[%c0_11, %c0_12] : memref<16x1xf32, #tpu.memory_space<vmem>>, vector<16x1xf32>
    tpu.vector_store %arg7[%c0_11, %c0_12], %27 {strides = array<i32>} : memref<16x1xf32, #tpu.memory_space<vmem>>, vector<16x1xf32>,
    %c0_13 = arith.constant 0 : index
    %c0_14 = arith.constant 0 : index
    %29 = vector.load %arg6[%c0_13, %c0_14] : memref<16x1xf32, #tpu.memory_space<vmem>>, vector<16x1xf32>
    tpu.vector_store %arg6[%c0_13, %c0_14], %17 {strides = array<i32>} : memref<16x1xf32, #tpu.memory_space<vmem>>, vector<16x1xf32>,
    %c0_15 = arith.constant 0 : index
    %c0_16 = arith.constant 0 : index
    %30 = vector.load %arg4[%c0_15, %c0_16] : memref<16x1xi32, #tpu.memory_space<vmem>>, vector<16x1xi32>
    %c0_17 = arith.constant 0 : index
    %c0_18 = arith.constant 0 : index
    %31 = vector.load %arg8[%c0_17, %c0_18] : memref<16x1xf32, #tpu.memory_space<vmem>>, vector<16x1xf32>
    %32 = vector.broadcast %30 : vector<16x1xi32> to vector<16x256xi32>
    %33 = arith.cmpi eq, %9, %32 : vector<16x256xi32>
    %cst_19 = arith.constant 0.000000e+00 : f32
    %34 = vector.broadcast %cst_19 : f32 to vector<16x256xf32>
    %35 = arith.select %33, %13, %34 : vector<16x256xi1>, vector<16x256xf32>
    %cst_20 = arith.constant dense<0.000000e+00> : vector<16xf32>
    %36 = vector.multi_reduction <add>, %35, %cst_20 [1] : vector<16x256xf32> to vector<16xf32>
    %37 = vector.shape_cast %36 : vector<16xf32> to vector<16x1xf32>
    %38 = arith.addf %31, %37 : vector<16x1xf32>
    %c0_21 = arith.constant 0 : index
    %c0_22 = arith.constant 0 : index
    %39 = vector.load %arg8[%c0_21, %c0_22] : memref<16x1xf32, #tpu.memory_space<vmem>>, vector<16x1xf32>
    tpu.vector_store %arg8[%c0_21, %c0_22], %38 {strides = array<i32>} : memref<16x1xf32, #tpu.memory_space<vmem>>, vector<16x1xf32>,
    %c0_i32_23 = arith.constant 0 : i32
    %40 = arith.cmpi eq, %arg1, %c0_i32_23 : i32
    %41 = arith.extui %40 : i1 to i32
    %c0_i32_24 = arith.constant 0 : i32
    %42 = arith.cmpi ne, %41, %c0_i32_24 : i32
    scf.if %42 {
      %c0_25 = arith.constant 0 : index
      %c0_26 = arith.constant 0 : index
      %43 = vector.load %arg8[%c0_25, %c0_26] : memref<16x1xf32, #tpu.memory_space<vmem>>, vector<16x1xf32>
      %c0_27 = arith.constant 0 : index
      %c0_28 = arith.constant 0 : index
      %44 = vector.load %arg6[%c0_27, %c0_28] : memref<16x1xf32, #tpu.memory_space<vmem>>, vector<16x1xf32>
      %45 = arith.subf %43, %44 : vector<16x1xf32>
      %c0_29 = arith.constant 0 : index
      %c0_30 = arith.constant 0 : index
      %46 = vector.load %arg7[%c0_29, %c0_30] : memref<16x1xf32, #tpu.memory_space<vmem>>, vector<16x1xf32>
      %47 = math.log %46 : vector<16x1xf32>
      %48 = arith.subf %45, %47 : vector<16x1xf32>
      %49 = vector.shape_cast %48 : vector<16x1xf32> to vector<16x1xf32>
      %50 = vector.broadcast %49 : vector<16x1xf32> to vector<16x128xf32>
      %c0_31 = arith.constant 0 : index
      %c0_32 = arith.constant 0 : index
      %51 = vector.load %arg5[%c0_31, %c0_32] : memref<16x128xf32, #tpu.memory_space<vmem>>, vector<16x128xf32>
      tpu.vector_store %arg5[%c0_31, %c0_32], %50 {strides = array<i32>} : memref<16x128xf32, #tpu.memory_space<vmem>>, vector<16x128xf32>,
    } else {
    }
    return
  }
  func.func @transform_0(%arg0: i32, %arg1: i32) -> (i32, i32) {
    %c0_i32 = arith.constant 0 : i32
    %c0_i32_0 = arith.constant 0 : i32
    return %arg0, %c0_i32 : i32, i32
  }
  func.func @transform_1(%arg0: i32, %arg1: i32) -> (i32, i32) {
    %c0_i32 = arith.constant 0 : i32
    %c0_i32_0 = arith.constant 0 : i32
    return %c0_i32, %arg1 : i32, i32
  }
  func.func @transform_2(%arg0: i32, %arg1: i32) -> (i32, i32) {
    %c0_i32 = arith.constant 0 : i32
    %c0_i32_0 = arith.constant 0 : i32
    return %arg0, %c0_i32 : i32, i32
  }
  func.func @transform_3(%arg0: i32, %arg1: i32) -> (i32, i32) {
    %c0_i32 = arith.constant 0 : i32
    %c0_i32_0 = arith.constant 0 : i32
    return %arg0, %c0_i32 : i32, i32
  }
}

</mosaic_0001>

<bundles_post_ra>
// kernel: tpu_custom_call.1
= control target key start
LH: loop header
LB: loop body
LE: loop exit
PB: predicated region body
PF: predicated region fallthrough
CT: control target
= control target key end

     0   :  { %8 = vsyncpa [#allocation6], 0  ;;  %s435_s0 = inlined_call_operand.vmem [shape: bf16[16,32], index: 0, kind: input, shape index: {}]   ;;  %s436_s1 = inlined_call_operand.hbm [shape: bf16[32,256], index: 1, kind: input, shape index: {}]   ;;  %s437_s2 = inlined_call_operand.vmem [shape: s32[16,1], index: 2, kind: input, shape index: {}]   ;;  %s438_s3 = inlined_call_operand.hbm [shape: f32[16,128], index: 3, kind: output, shape index: {}]  }
   0x1   :  { %9 = vsyncpa [#allocation7], 0  ;;  %s347_s12 = smov [#allocation5]   ;;  %s299_s16 = scalar_lea.hbm %s436_s1, 512 }
   0x2   :  { %s17_s13 = sshll.u32 %s347_s12, 4  ;;  %p300_p0 = scmp.ne.s32.totalorder %s436_s1, %s299_s16  ;;  %s18_s13 = int_to_ptr.vmem [resolvable:$true] %s17_s13 }
   0x3   :  { %p303_p1 = scmp.lt.u32.totalorder %s299_s16, %s436_s1 }
   0x5   :  { %p305_p2 = pnand %p303_p1, %p300_p0 }
   0x7   :  { %308 = shalt.err (!%p305_p2)
}
   0x8   :  { %s309_s21 = scalar_lea.vmem %s18_s13, 512  ;;  %p314_p4 = scmp.lt.s32.totalorder %s18_s13, %s18_s13 }
   0x9   :  { %p310_p3 = scmp.ne.s32.totalorder %s18_s13, %s309_s21  ;;  %p315_p5 = scmp.lt.s32.totalorder %s309_s21, %s309_s21 }
   0xb   :  { %p316_p6 = por %p315_p5, %p314_p4 }
   0xd   :  { %p317_p7 = pnand %p316_p6, %p310_p3 }
   0xf   :  { %320 = shalt.err (!%p317_p7)
}
  0x10   :  { %s348_s22 = smov 128   ;;  %s349_s23 = smov 8  }
  0x11   :  { %23 = dma.hbm_to_vmem [thread:$0]  %s436_s1, 512, %s18_s13, [#allocation6], %s348_s22, %s348_s22, %s349_s23  }
  0x12   :  { %343 = dma.done.wait [#allocation6], 512  }
  0x13   :  { %344 = vsyncadd [#allocation6], 4294966784  ;;  %v350_v0 = vmov 0   ;;  %v276_v1 = vld [vmem:[#allocation5 + $0x4] ss:$8 sps:$4 sm:$0xff]   ;;  %v282_v5 = vld [vmem:[%s435_s0] sm:$0xff]   ;;  %v119_v7 = vlaneseq }
  0x14   :  { %108 = vmatprep.mubr.bf16.mxu0 %v350_v0  ;;  %275 = vset.pattern.permute.xlu0 %v350_v0  ;;  %v278_v2 = vld [vmem:[#allocation5] ss:$8 sps:$4 sm:$0xff]   ;;  %v279_v3 = vld [vmem:[#allocation5 + $0x14] ss:$8 sps:$4 sm:$0xff]   ;;  %v281_v4 = vld [vmem:[#allocation5 + $0x10] ss:$8 sps:$4 sm:$0xff]  }
  0x15   :  { %274 = vset.pattern.permute.xlu1 %v350_v0  ;;  %76 = vmatprep.subr.bf16.mxu0 %v276_v1  ;;  %vm72_vm0 = vcmask 261120   ;;  %vm34_vm1 = vcmask 7168   ;;  %v351_v6 = vmov -inf   ;;  %v394_v8 = vand.u32 127, %v119_v7  ;;  %v187_v18 = vld [vmem:[%s437_s2] sm:$0xff]  ;;  %v188_v28 = vld [vmem:[%s437_s2 + $0x8] sm:$0xff] }
  0x16   :  { %77 = vmatpush1.bf16.msra.mxu0 %v278_v2  ;;  %35 = vst.msk [vmem:[#allocation2] sm:$0xff] %vm34_vm1, %v351_v6  ;;  %36 = vst.msk [vmem:[#allocation2 + $0x8] sm:$0xff] %vm34_vm1, %v351_v6  ;;  %v352_v19 = vmov 0.0   ;;  %s353_s2 = smov [#allocation8]  }
  0x17   :  { %78 = vmatprep.subr.bf16.mxu0 %v279_v3  ;;  %v397_v9 = vadd.s32 128, %v394_v8  ;;  %39 = vst.msk [vmem:[#allocation4] sm:$0xff] %vm34_vm1, %v352_v19  ;;  %37 = vst.msk [vmem:[#allocation3] sm:$0xff] %vm34_vm1, %v352_v19  ;;  %s249_s30 = sshll.u32 %s353_s2, 4  ;;  %s250_s30 = int_to_ptr.vmem [resolvable:$true] %s249_s30 }
  0x18   :  { %38 = vst.msk [vmem:[#allocation3 + $0x8] sm:$0xff] %vm34_vm1, %v352_v19  ;;  %40 = vst.msk [vmem:[#allocation4 + $0x8] sm:$0xff] %vm34_vm1, %v352_v19  ;;  %s321_s4 = scalar_lea.vmem %s250_s30, 256  ;;  %p326_p9 = scmp.lt.s32.totalorder %s250_s30, %s250_s30 }
  0x19   :  { %vm127_vm2 = vcmp.lt.s32.totalorder %v397_v9, 200  ;;  %p322_p8 = scmp.ne.s32.totalorder %s250_s30, %s321_s4  ;;  %p327_p10 = scmp.lt.s32.totalorder %s321_s4, %s321_s4 }
  0x1a   :  { %79 = vmatpush1.bf16.msra.mxu0 %v281_v4 }
  0x1b   :  { %p328_p11 = por %p327_p10, %p326_p9 }
  0x1d   :  { %266 = vmatmul.mubr.msk.bf16.vlgmr.msra.gmra.mrb[0].mxu0 %vm72_vm0, %v282_v5  ;;  %v132_v20 = vld [vmem:[#allocation2] sm:$0xff]  ;;  %v133_v23 = vld [vmem:[#allocation2 + $0x8] sm:$0xff]  ;;  %p329_p12 = pnand %p328_p11, %p322_p8 }
  0x1e   :  { %v189_v53 = vld [vmem:[#allocation4] sm:$0xff]  ;;  %v148_v59 = vld [vmem:[#allocation3] sm:$0xff] }
  0x1f   :  { %v149_v63 = vld [vmem:[#allocation3 + $0x8] sm:$0xff]  ;;  %v190_v4 = vld [vmem:[#allocation4 + $0x8] sm:$0xff] }
  0xf0   :  { %v110_v10 = vpop.f32.mrb[0].mxu0 }
  0xf1   :  { %v112_v11 = vpop.f32.mrb[1].mxu0 }
  0xf2   :  { %v129_v12 = vsel %vm127_vm2, %v112_v11, -1e+30  ;;  %v114_v13 = vpop.f32.mrb[2].mxu0 }
  0xf3   :  { %v116_v14 = vpop.f32.mrb[3].mxu0  ;;  %v134_v15 = vmax.f32 %v110_v10, %v129_v12 }
  0xf4   :  { %v131_v16 = vsel %vm127_vm2, %v116_v14, -1e+30 }
  0xf5   :  { %135 = vmax.xlane.f32.xlu0 %v134_v15  ;;  %v137_v17 = vmax.f32 %v114_v13, %v131_v16 }
  0xf9   :  { %138 = vmax.xlane.f32.xlu0 %v137_v17 }
 0x10f   :  { %192 = vperm.xlu0 %275, %v187_v18  }
 0x182   :  { %v136_v21 = vpop.xlane.xlu0 %135 }
 0x183   :  { %v140_v22 = vmax.f32 %v132_v20, %v136_v21 }
 0x185   :  { %v142_v24 = vsub.f32 %v132_v20, %v140_v22  ;;  %185 = vst.msk [vmem:[#allocation2] sm:$0xff] %vm34_vm1, %v140_v22  ;;  %154 = vperm.xlu1 %274, %v140_v22  }
 0x186   :  { %v139_v25 = vpop.xlane.xlu0 %138 }
 0x187   :  { %v141_v26 = vmax.f32 %v133_v23, %v139_v25  ;;  %v144_v56 = vmul.f32 1.442695, %v142_v24 }
 0x189   :  { %v143_v27 = vsub.f32 %v133_v23, %v141_v26  ;;  %186 = vst.msk [vmem:[#allocation2 + $0x8] sm:$0xff] %vm34_vm1, %v141_v26  ;;  %159 = vperm.xlu1 %274, %v141_v26  }
 0x18b   :  { %v146_v57 = vmul.f32 1.442695, %v143_v27 }
 0x18c   :  { %v220_v11 = vld [vmem:[#allocation2] sm:$0xff] }
 0x18d   :  { %195 = vperm.xlu1 %274, %v188_v28  }
 0x18e   :  { %v193_v29 = vpop.permute.xlu0 %192 }
 0x18f   :  { %vm197_vm3 = vcmp.eq.s32.totalorder %v394_v8, %v193_v29  ;;  %vm198_vm4 = vcmp.eq.s32.totalorder %v397_v9, %v193_v29 }
 0x190   :  { %v201_v30 = vsel %vm197_vm3, %v110_v10, 0.0  ;;  %v202_v31 = vsel %vm198_vm4, %v129_v12, 0.0  ;;  %v221_v17 = vld [vmem:[#allocation2 + $0x8] sm:$0xff] }
 0x191   :  { %v205_v32 = vadd.f32 %v202_v31, %v201_v30 }
 0x193   :  { %206 = vadd.xlane.f32.xlu0 %v205_v32 }
 0x204   :  { %v155_v33 = vpop.permute.xlu1 %154 }
 0x205   :  { %v162_v34 = vsub.f32 %v110_v10, %v155_v33  ;;  %v163_v35 = vsub.f32 %v129_v12, %v155_v33 }
 0x207   :  { %v166_v36 = vmul.f32 1.442695, %v162_v34  ;;  %v168_v37 = vmul.f32 1.442695, %v163_v35 }
 0x208   :  { %v160_v38 = vpop.permute.xlu1 %159 }
 0x209   :  { %283 = vpow2.f32 %v166_v36  ;;  %v164_v39 = vsub.f32 %v114_v13, %v160_v38  ;;  %v165_v40 = vsub.f32 %v131_v16, %v160_v38 }
 0x20a   :  { %285 = vpow2.f32 %v168_v37 }
 0x20b   :  { %v170_v41 = vmul.f32 1.442695, %v164_v39  ;;  %v172_v42 = vmul.f32 1.442695, %v165_v40 }
 0x20c   :  { %v196_v45 = vpop.permute.xlu1 %195 }
 0x20d   :  { %287 = vpow2.f32 %v170_v41  ;;  %vm199_vm5 = vcmp.eq.s32.totalorder %v394_v8, %v196_v45  ;;  %vm200_vm6 = vcmp.eq.s32.totalorder %v397_v9, %v196_v45 }
 0x20e   :  { %289 = vpow2.f32 %v172_v42  ;;  %v203_v50 = vsel %vm199_vm5, %v114_v13, 0.0  ;;  %v204_v51 = vsel %vm200_vm6, %v131_v16, 0.0 }
 0x20f   :  { %v208_v52 = vadd.f32 %v204_v51, %v203_v50  ;;  %291 = vpow2.f32 %v144_v56 }
 0x210   :  { %293 = vpow2.f32 %v146_v57 }
 0x213   :  { %v284_v43 = vpop.eup %283 }
 0x214   :  { %v286_v44 = vpop.eup %285 }
 0x215   :  { %v174_v46 = vadd.f32 %v286_v44, %v284_v43 }
 0x217   :  { %v288_v47 = vpop.eup %287  ;;  %175 = vadd.xlane.f32.xlu1 %v174_v46 }
 0x218   :  { %v290_v48 = vpop.eup %289 }
 0x219   :  { %v177_v49 = vadd.f32 %v290_v48, %v288_v47  ;;  %v292_v58 = vpop.eup %291 }
 0x21a   :  { %v150_v60 = vmul.f32 %v292_v58, %v148_v59  ;;  %v294_v61 = vpop.eup %293 }
 0x21b   :  { %178 = vadd.xlane.f32.xlu1 %v177_v49  ;;  %v151_v1 = vmul.f32 %v294_v61, %v149_v63 }
 0x21f   :  { %209 = vadd.xlane.f32.xlu1 %v208_v52 }
 0x220   :  { %v207_v54 = vpop.xlane.xlu0 %206 }
 0x221   :  { %v211_v55 = vadd.f32 %v207_v54, %v189_v53 }
 0x223   :  { %213 = vst.msk [vmem:[#allocation4] sm:$0xff] %vm34_vm1, %v211_v55 }
 0x22a   :  { %v218_v9 = vld [vmem:[#allocation4] sm:$0xff] }
 0x22b   :  { %v222_v12 = vsub.f32 %v218_v9, %v220_v11 }
 0x2a4   :  { %v176_v62 = vpop.xlane.xlu1 %175 }
 0x2a5   :  { %v180_v0 = vadd.f32 %v176_v62, %v150_v60 }
 0x2a7   :  { %183 = vst.msk [vmem:[#allocation3] sm:$0xff] %vm34_vm1, %v180_v0 }
 0x2a8   :  { %v179_v2 = vpop.xlane.xlu1 %178 }
 0x2a9   :  { %v181_v3 = vadd.f32 %v179_v2, %v151_v1 }
 0x2ab   :  { %184 = vst.msk [vmem:[#allocation3 + $0x8] sm:$0xff] %vm34_vm1, %v181_v3 }
 0x2ac   :  { %v210_v5 = vpop.xlane.xlu1 %209 }
 0x2ad   :  { %v212_v6 = vadd.f32 %v210_v5, %v190_v4 }
 0x2ae   :  { %v224_v7 = vld [vmem:[#allocation3] sm:$0xff] }
 0x2af   :  { %214 = vst.msk [vmem:[#allocation4 + $0x8] sm:$0xff] %vm34_vm1, %v212_v6  ;;  %295 = vlog2.f32 %v224_v7 }
 0x2b2   :  { %v225_v8 = vld [vmem:[#allocation3 + $0x8] sm:$0xff] }
 0x2b3   :  { %297 = vlog2.f32 %v225_v8 }
 0x2b6   :  { %v219_v14 = vld [vmem:[#allocation4 + $0x8] sm:$0xff] }
 0x2b7   :  { %v223_v18 = vsub.f32 %v219_v14, %v221_v17 }
 0x2b9   :  { %v296_v10 = vpop.eup %295 }
 0x2ba   :  { %v227_v13 = vmul.f32 0.6931472, %v296_v10 }
 0x2bc   :  { %v230_v15 = vsub.f32 %v222_v12, %v227_v13 }
 0x2bd   :  { %v298_v16 = vpop.eup %297 }
 0x2be   :  { %234 = vperm.xlu1 %274, %v230_v15   ;;  %v229_v19 = vmul.f32 0.6931472, %v298_v16 }
 0x2c0   :  { %v231_v20 = vsub.f32 %v223_v18, %v229_v19 }
 0x2c2   :  { %239 = vperm.xlu1 %274, %v231_v20  }
 0x33d   :  { %v235_v21 = vpop.permute.xlu1 %234 }
 0x33e   :  { %242 = vst [vmem:[#allocation8] sm:$0xff] %v235_v21 }
 0x341   :  { %v240_v22 = vpop.permute.xlu1 %239 }
 0x342   :  { %243 = vst [vmem:[#allocation8 + $0x8] sm:$0xff] %v240_v22 }
 0x343   :  { %332 = shalt.err (!%p329_p12)
}
 0x344   :  { %s333_s7 = scalar_lea.hbm %s438_s3, 256 }
 0x345   :  { %p334_p13 = scmp.ne.s32.totalorder %s438_s3, %s333_s7  ;;  %p337_p0 = scmp.lt.u32.totalorder %s333_s7, %s438_s3 }
 0x347   :  { %p339_p1 = pnand %p337_p0, %p334_p13 }
 0x349   :  { %342 = shalt.err (!%p339_p1)
}
 0x34a   :  { %255 = dma.vmem_to_hbm [thread:$0]  %s250_s30, 256, %s438_s3, [#allocation7], %s348_s22, %s348_s22, %s349_s23  }
 0x34b   :  { %345 = dma.done.wait [#allocation7], 256  }
 0x34c   :  { %346 = vsyncadd [#allocation7], 4294967040 }
 0x34d   :  { %259 = vsyncpa [#allocation6], 1 }
 0x34e   :  { %260 = vsyncpa [#allocation7], 1 }

</bundles_post_ra>
